<compile_context>
chip_gen: v6e
topology: v6e:2x2x1
jax: 0.10.0
libtpu: 0.0.40
codegen_flags: <defaults>
</compile_context>

<pallas_src>
import jax
import jax.numpy as jnp
from jax.experimental import pallas as pl
from jax.experimental.pallas import tpu as pltpu

LANE = 128
SUBLANE = 8


def _round_up(x, m):
    return ((x + m - 1) // m) * m


def _cdiv(a, b):
    return (a + b - 1) // b


def classification_head_kernel(x_ref, w1_ref, b1_ref, w2_ref, b2_ref, o_ref, acc_ref):
    # Grid: (batch tile i, K tile k over the dense contraction dim H).
    #   x:  [tm, tk]    w1: [tk, H]     b1: [1, H]
    #   w2: [H, Lpad]   b2: [1, Lpad]   o:  [tm, Lpad]   acc: [tm, H] f32
    # Dropout layers are identity in eval mode (inference semantics).
    # TODO(synk): training-mode dropout (pltpu.prng_random_bits mask) not implemented.
    k = pl.program_id(1)

    @pl.when(k == 0)
    def _():
        acc_ref[...] = jnp.zeros_like(acc_ref)

    # dense: stream W1 over K; MXU matmul in the weight dtype with f32 accumulation.
    x = x_ref[...].astype(w1_ref.dtype)
    acc_ref[...] += jnp.dot(x, w1_ref[...], preferred_element_type=jnp.float32)

    @pl.when(k == pl.num_programs(1) - 1)
    def _():
        # bias + tanh epilogue in f32 (VPU/EUP), then out_proj on the lane-padded N so
        # the final store is an unmasked, lane-dense vst.
        h = jnp.tanh(acc_ref[...] + b1_ref[...].astype(jnp.float32))
        y = jnp.dot(h.astype(w2_ref.dtype), w2_ref[...],
                    preferred_element_type=jnp.float32)
        y = y + b2_ref[...].astype(jnp.float32)
        o_ref[...] = y.astype(o_ref.dtype)


def prepare_classification_head_params(dense_w, dense_b, out_w, out_b,
                                       weight_dtype=None):
    """One-time parameter prep (call at model load, NOT per forward call):
       - transpose PyTorch [out, in] weights to [in, out] so the kernel computes x @ W
       - zero-pad the out_proj lane dim (num_labels) up to a multiple of 128
       - optionally cast weights (e.g. jnp.bfloat16) for the pure-bf16 MXU fast path;
         biases stay f32. On v7x (64 MiB VMEM/TC, no int MXU path) bf16/fp8 weights are
         strongly recommended.
    """
    H = dense_w.shape[1]
    L = out_w.shape[0]
    Lpad = _round_up(max(L, 1), LANE)

    w1 = jnp.transpose(dense_w)                        # [H, H]
    w2 = jnp.pad(jnp.transpose(out_w),                 # [H, Lpad], zero-filled pad
                 ((0, 0), (0, Lpad - L)))
    b1 = dense_b.reshape(1, H).astype(jnp.float32)     # [1, H]
    b2 = jnp.pad(out_b, (0, Lpad - L)).reshape(1, Lpad).astype(jnp.float32)

    if weight_dtype is not None:
        w1 = w1.astype(weight_dtype)
        w2 = w2.astype(weight_dtype)
    return w1, b1, w2, b2, L


def _pick_tiles(B, H, vmem_cap):
    # K tile must divide H exactly (a partial K block would fold garbage into the
    # accumulator). 512 keeps each streamed W1 block at a few MiB while feeding the MXU.
    if H % 512 == 0:
        tk = 512
    elif H % 256 == 0:
        tk = 256
    elif H % 128 == 0:
        tk = 128
    else:
        tk = H

    # Batch tile: as large as VMEM comfortably allows (amortizes ~0.35us/grid-step),
    # but split so the "parallel" batch axis has work for both v7x TensorCores.
    tm_cap = 1024 if vmem_cap >= (100 << 20) else 512
    Bp8 = _round_up(B, SUBLANE)
    if Bp8 <= tm_cap:
        tm = Bp8
    else:
        tm = min(_round_up(_cdiv(Bp8, 2), SUBLANE), tm_cap)
    return tm, tk


def classification_head(features, w1, b1, w2, b2, num_labels, *, tm=None,
                        single_buffer_params=True):
    """features: [B, H]; (w1, b1, w2, b2) from prepare_classification_head_params."""
    B, H = features.shape
    Lpad = w2.shape[1]

    try:
        vmem_cap = int(pltpu.get_tpu_info().vmem_capacity_bytes)
    except Exception:
        vmem_cap = 64 << 20  # conservative default (v7x per-TC)

    tm_auto, tk = _pick_tiles(B, H, vmem_cap)
    tm = tm_auto if tm is None else min(_round_up(tm, SUBLANE), _round_up(B, SUBLANE))
    num_m = _cdiv(B, tm)
    num_k = H // tk

    def isz(a):
        return jnp.dtype(a.dtype).itemsize

    # VMEM budget including the default 2x double-buffering of pipelined blocks and the
    # f32 accumulator scratch; constant param blocks are single-buffered when possible.
    param_buf = 1 if single_buffer_params else 2
    vmem_bytes = (2 * tm * tk * isz(features)                 # activation tiles
                  + 2 * tk * H * isz(w1)                      # streamed W1 blocks
                  + param_buf * (H * isz(b1) + H * Lpad * isz(w2) + Lpad * isz(b2))
                  + 2 * tm * Lpad * isz(features)             # output tiles
                  + tm * H * 4                                # f32 accumulator scratch
                  + (2 << 20))                                # headroom
    vmem_limit = int(min(max(vmem_bytes, 32 << 20), int(vmem_cap * 0.9)))

    cost = pl.CostEstimate(
        flops=2 * B * H * (H + Lpad),
        transcendentals=B * H,
        bytes_accessed=(B * H * isz(features) + H * H * isz(w1)
                        + H * Lpad * isz(w2) + B * Lpad * isz(features)),
    )

    def build(use_buffered_hint):
        if use_buffered_hint:
            def const_spec(shape):
                return pl.BlockSpec(shape, lambda i, k: (0, 0),
                                    pipeline_mode=pl.Buffered(1))
        else:
            def const_spec(shape):
                return pl.BlockSpec(shape, lambda i, k: (0, 0))

        return pl.pallas_call(
            classification_head_kernel,
            out_shape=jax.ShapeDtypeStruct((B, Lpad), features.dtype),
            grid=(num_m, num_k),
            in_specs=[
                pl.BlockSpec((tm, tk), lambda i, k: (i, k)),   # activations: M x K tiled
                pl.BlockSpec((tk, H), lambda i, k: (k, 0)),    # W1: K-streamed, pipelined
                const_spec((1, H)),                            # dense bias: resident
                const_spec((H, Lpad)),                         # out_proj weight: resident
                const_spec((1, Lpad)),                         # out_proj bias: resident
            ],
            out_specs=pl.BlockSpec((tm, Lpad), lambda i, k: (i, 0)),
            scratch_shapes=[pltpu.VMEM((tm, H), jnp.float32)],
            compiler_params=pltpu.CompilerParams(
                dimension_semantics=("parallel", "arbitrary"),
                vmem_limit_bytes=vmem_limit,
            ),
            cost_estimate=cost,
        )

    # TODO(synk): for tiny-B weight-bound calls, split the dense output-N across the two
    # v7x TensorCores (or cross-call prefetch W1, P10) instead of batch sharding.
    if single_buffer_params:
        try:
            out = build(True)(features, w1, b1, w2, b2)
        except Exception:
            # Older JAX without pipeline_mode / Buffered(1) support: default buffering.
            out = build(False)(features, w1, b1, w2, b2)
    else:
        out = build(False)(features, w1, b1, w2, b2)

    # Slice off the zero-filled label padding (no batch padding was ever materialized).
    return out[:, :num_labels]


if __name__ == "__main__":
    # Small config consistent with the module: hidden_size=32, num_labels=4, batch=8.
    # (At this toy size plain XLA fusion would win; the kernel targets transformer-scale H/B.)
    B, H, L = 8, 32, 4

    key = jax.random.PRNGKey(0)
    k_x, k_w1, k_b1, k_w2, k_b2 = jax.random.split(key, 5)

    features = jax.random.normal(k_x, (B, H), dtype=jnp.float32)
    dense_w = jax.random.normal(k_w1, (H, H), dtype=jnp.float32) * 0.05
    dense_b = jax.random.normal(k_b1, (H,), dtype=jnp.float32) * 0.05
    out_w = jax.random.normal(k_w2, (L, H), dtype=jnp.float32) * 0.05
    out_b = jax.random.normal(k_b2, (L,), dtype=jnp.float32) * 0.05

    # Reference (plain JAX) for the same eval-mode forward semantics.
    ref = jnp.tanh(features @ dense_w.T + dense_b) @ out_w.T + out_b

    # f32 path.
    w1, b1, w2, b2, num_labels = prepare_classification_head_params(
        dense_w, dense_b, out_w, out_b)
    out = jax.block_until_ready(
        classification_head(features, w1, b1, w2, b2, num_labels))
    assert out.shape == (B, L)
    assert jnp.allclose(out, ref, atol=1e-5, rtol=1e-5)

    # bf16-weight fast path (pure bf16 MXU operands, f32 accumulation) — loose tolerance.
    w1b, b1b, w2b, b2b, _ = prepare_classification_head_params(
        dense_w, dense_b, out_w, out_b, weight_dtype=jnp.bfloat16)
    out_bf16 = jax.block_until_ready(
        classification_head(features, w1b, b1b, w2b, b2b, num_labels))
    assert out_bf16.shape == (B, L)
    assert jnp.allclose(out_bf16, ref, atol=5e-2, rtol=5e-2)

    print("KERNEL_OK")
</pallas_src>

<mosaic_0001>
module attributes {stable_mosaic.version = 11 : i64} {
  func.func @classification_head_kernel(%arg0: i32, %arg1: i32, %arg2: memref<8x32xf32, #tpu.memory_space<vmem>>, %arg3: memref<32x32xf32, #tpu.memory_space<vmem>>, %arg4: memref<1x32xf32, #tpu.memory_space<vmem>>, %arg5: memref<32x128xf32, #tpu.memory_space<vmem>>, %arg6: memref<1x128xf32, #tpu.memory_space<vmem>>, %arg7: memref<8x128xf32, #tpu.memory_space<vmem>>, %arg8: memref<8x32xf32, #tpu.memory_space<vmem>>) attributes {dimension_semantics = [#tpu.dimension_semantics<parallel>, #tpu.dimension_semantics<arbitrary>], iteration_bounds = array<i64: 1, 1>, scalar_prefetch = 0 : i64, scratch_operands = 1 : i64, tpu.core_type = #tpu.core_type<tc>, window_params = [{transform_indices = @transform_0, window_bounds = array<i64: 8, 32>}, {transform_indices = @transform_1, window_bounds = array<i64: 32, 32>}, {pipeline_mode = #tpu.pipeline_mode<synchronous>, transform_indices = @transform_2, window_bounds = array<i64: 1, 32>}, {pipeline_mode = #tpu.pipeline_mode<synchronous>, transform_indices = @transform_3, window_bounds = array<i64: 32, 128>}, {pipeline_mode = #tpu.pipeline_mode<synchronous>, transform_indices = @transform_4, window_bounds = array<i64: 1, 128>}, {transform_indices = @transform_5, window_bounds = array<i64: 8, 128>}]} {
    %c0_i32 = arith.constant 0 : i32
    %0 = arith.cmpi eq, %arg1, %c0_i32 : i32
    %1 = arith.extui %0 : i1 to i32
    %c0_i32_0 = arith.constant 0 : i32
    %2 = arith.cmpi ne, %1, %c0_i32_0 : i32
    scf.if %2 {
      %cst_10 = arith.constant 0.000000e+00 : f32
      %12 = vector.broadcast %cst_10 : f32 to vector<8x32xf32>
      %c0_11 = arith.constant 0 : index
      %c0_12 = arith.constant 0 : index
      %13 = vector.load %arg8[%c0_11, %c0_12] : memref<8x32xf32, #tpu.memory_space<vmem>>, vector<8x32xf32>
      tpu.vector_store %arg8[%c0_11, %c0_12], %12 {strides = array<i32>} : memref<8x32xf32, #tpu.memory_space<vmem>>, vector<8x32xf32>,
    } else {
    }
    %c0 = arith.constant 0 : index
    %c0_1 = arith.constant 0 : index
    %3 = vector.load %arg2[%c0, %c0_1] : memref<8x32xf32, #tpu.memory_space<vmem>>, vector<8x32xf32>
    %c0_2 = arith.constant 0 : index
    %c0_3 = arith.constant 0 : index
    %4 = vector.load %arg8[%c0_2, %c0_3] : memref<8x32xf32, #tpu.memory_space<vmem>>, vector<8x32xf32>
    %c0_4 = arith.constant 0 : index
    %c0_5 = arith.constant 0 : index
    %5 = vector.load %arg3[%c0_4, %c0_5] : memref<32x32xf32, #tpu.memory_space<vmem>>, vector<32x32xf32>
    %cst = arith.constant dense<0.000000e+00> : vector<8x32xf32>
    %6 = tpu.matmul %3, %5, %cst {dimension_numbers = #tpu.dot_dimension_numbers<[1], [0], [0], [1], [0, 0, 1, 1], [], []>} : vector<8x32xf32>, vector<32x32xf32>, vector<8x32xf32> -> vector<8x32xf32>
    %7 = arith.addf %4, %6 : vector<8x32xf32>
    %c0_6 = arith.constant 0 : index
    %c0_7 = arith.constant 0 : index
    %8 = vector.load %arg8[%c0_6, %c0_7] : memref<8x32xf32, #tpu.memory_space<vmem>>, vector<8x32xf32>
    tpu.vector_store %arg8[%c0_6, %c0_7], %7 {strides = array<i32>} : memref<8x32xf32, #tpu.memory_space<vmem>>, vector<8x32xf32>,
    %c0_i32_8 = arith.constant 0 : i32
    %9 = arith.cmpi eq, %arg1, %c0_i32_8 : i32
    %10 = arith.extui %9 : i1 to i32
    %c0_i32_9 = arith.constant 0 : i32
    %11 = arith.cmpi ne, %10, %c0_i32_9 : i32
    scf.if %11 {
      %c0_10 = arith.constant 0 : index
      %c0_11 = arith.constant 0 : index
      %12 = vector.load %arg8[%c0_10, %c0_11] : memref<8x32xf32, #tpu.memory_space<vmem>>, vector<8x32xf32>
      %c0_12 = arith.constant 0 : index
      %c0_13 = arith.constant 0 : index
      %13 = vector.load %arg4[%c0_12, %c0_13] : memref<1x32xf32, #tpu.memory_space<vmem>>, vector<1x32xf32>
      %14 = vector.broadcast %13 : vector<1x32xf32> to vector<8x32xf32>
      %15 = arith.addf %12, %14 : vector<8x32xf32>
      %16 = math.tanh %15 : vector<8x32xf32>
      %c0_14 = arith.constant 0 : index
      %c0_15 = arith.constant 0 : index
      %17 = vector.load %arg5[%c0_14, %c0_15] : memref<32x128xf32, #tpu.memory_space<vmem>>, vector<32x128xf32>
      %cst_16 = arith.constant dense<0.000000e+00> : vector<8x128xf32>
      %18 = tpu.matmul %16, %17, %cst_16 {dimension_numbers = #tpu.dot_dimension_numbers<[1], [0], [0], [1], [0, 0, 1, 1], [], []>} : vector<8x32xf32>, vector<32x128xf32>, vector<8x128xf32> -> vector<8x128xf32>
      %c0_17 = arith.constant 0 : index
      %c0_18 = arith.constant 0 : index
      %19 = vector.load %arg6[%c0_17, %c0_18] : memref<1x128xf32, #tpu.memory_space<vmem>>, vector<1x128xf32>
      %20 = vector.broadcast %19 : vector<1x128xf32> to vector<8x128xf32>
      %21 = arith.addf %18, %20 : vector<8x128xf32>
      %c0_19 = arith.constant 0 : index
      %c0_20 = arith.constant 0 : index
      %22 = vector.load %arg7[%c0_19, %c0_20] : memref<8x128xf32, #tpu.memory_space<vmem>>, vector<8x128xf32>
      tpu.vector_store %arg7[%c0_19, %c0_20], %21 {strides = array<i32>} : memref<8x128xf32, #tpu.memory_space<vmem>>, vector<8x128xf32>,
    } else {
    }
    return
  }
  func.func @transform_0(%arg0: i32, %arg1: i32) -> (i32, i32) {
    %c0_i32 = arith.constant 0 : i32
    return %arg0, %arg1 : i32, i32
  }
  func.func @transform_1(%arg0: i32, %arg1: i32) -> (i32, i32) {
    %c0_i32 = arith.constant 0 : i32
    %c0_i32_0 = arith.constant 0 : i32
    return %arg1, %c0_i32 : i32, i32
  }
  func.func @transform_2(%arg0: i32, %arg1: i32) -> (i32, i32) {
    %c0_i32 = arith.constant 0 : i32
    %c0_i32_0 = arith.constant 0 : i32
    %c0_i32_1 = arith.constant 0 : i32
    return %c0_i32, %c0_i32_0 : i32, i32
  }
  func.func @transform_3(%arg0: i32, %arg1: i32) -> (i32, i32) {
    %c0_i32 = arith.constant 0 : i32
    %c0_i32_0 = arith.constant 0 : i32
    %c0_i32_1 = arith.constant 0 : i32
    return %c0_i32, %c0_i32_0 : i32, i32
  }
  func.func @transform_4(%arg0: i32, %arg1: i32) -> (i32, i32) {
    %c0_i32 = arith.constant 0 : i32
    %c0_i32_0 = arith.constant 0 : i32
    %c0_i32_1 = arith.constant 0 : i32
    return %c0_i32, %c0_i32_0 : i32, i32
  }
  func.func @transform_5(%arg0: i32, %arg1: i32) -> (i32, i32) {
    %c0_i32 = arith.constant 0 : i32
    %c0_i32_0 = arith.constant 0 : i32
    return %arg0, %c0_i32 : i32, i32
  }
}

module attributes {stable_mosaic.version = 11 : i64} {
  func.func @classification_head_kernel(%arg0: i32, %arg1: i32, %arg2: memref<8x32xf32, #tpu.memory_space<vmem>>, %arg3: memref<32x32xf32, #tpu.memory_space<vmem>>, %arg4: memref<1x32xf32, #tpu.memory_space<vmem>>, %arg5: memref<32x128xf32, #tpu.memory_space<vmem>>, %arg6: memref<1x128xf32, #tpu.memory_space<vmem>>, %arg7: memref<8x128xf32, #tpu.memory_space<vmem>>, %arg8: memref<8x32xf32, #tpu.memory_space<vmem>>) attributes {dimension_semantics = [#tpu.dimension_semantics<parallel>, #tpu.dimension_semantics<arbitrary>], iteration_bounds = array<i64: 1, 1>, scalar_prefetch = 0 : i64, scratch_operands = 1 : i64, tpu.core_type = #tpu.core_type<tc>, window_params = [{transform_indices = @transform_0, window_bounds = array<i64: 8, 32>}, {transform_indices = @transform_1, window_bounds = array<i64: 32, 32>}, {pipeline_mode = #tpu.pipeline_mode<synchronous>, transform_indices = @transform_2, window_bounds = array<i64: 1, 32>}, {pipeline_mode = #tpu.pipeline_mode<synchronous>, transform_indices = @transform_3, window_bounds = array<i64: 32, 128>}, {pipeline_mode = #tpu.pipeline_mode<synchronous>, transform_indices = @transform_4, window_bounds = array<i64: 1, 128>}, {transform_indices = @transform_5, window_bounds = array<i64: 8, 128>}]} {
    %c0_i32 = arith.constant 0 : i32
    %0 = arith.cmpi eq, %arg1, %c0_i32 : i32
    %1 = arith.extui %0 : i1 to i32
    %c0_i32_0 = arith.constant 0 : i32
    %2 = arith.cmpi ne, %1, %c0_i32_0 : i32
    scf.if %2 {
      %cst_10 = arith.constant 0.000000e+00 : f32
      %12 = vector.broadcast %cst_10 : f32 to vector<8x32xf32>
      %c0_11 = arith.constant 0 : index
      %c0_12 = arith.constant 0 : index
      %13 = vector.load %arg8[%c0_11, %c0_12] : memref<8x32xf32, #tpu.memory_space<vmem>>, vector<8x32xf32>
      tpu.vector_store %arg8[%c0_11, %c0_12], %12 {strides = array<i32>} : memref<8x32xf32, #tpu.memory_space<vmem>>, vector<8x32xf32>,
    } else {
    }
    %c0 = arith.constant 0 : index
    %c0_1 = arith.constant 0 : index
    %3 = vector.load %arg2[%c0, %c0_1] : memref<8x32xf32, #tpu.memory_space<vmem>>, vector<8x32xf32>
    %c0_2 = arith.constant 0 : index
    %c0_3 = arith.constant 0 : index
    %4 = vector.load %arg8[%c0_2, %c0_3] : memref<8x32xf32, #tpu.memory_space<vmem>>, vector<8x32xf32>
    %c0_4 = arith.constant 0 : index
    %c0_5 = arith.constant 0 : index
    %5 = vector.load %arg3[%c0_4, %c0_5] : memref<32x32xf32, #tpu.memory_space<vmem>>, vector<32x32xf32>
    %cst = arith.constant dense<0.000000e+00> : vector<8x32xf32>
    %6 = tpu.matmul %3, %5, %cst {dimension_numbers = #tpu.dot_dimension_numbers<[1], [0], [0], [1], [0, 0, 1, 1], [], []>} : vector<8x32xf32>, vector<32x32xf32>, vector<8x32xf32> -> vector<8x32xf32>
    %7 = arith.addf %4, %6 : vector<8x32xf32>
    %c0_6 = arith.constant 0 : index
    %c0_7 = arith.constant 0 : index
    %8 = vector.load %arg8[%c0_6, %c0_7] : memref<8x32xf32, #tpu.memory_space<vmem>>, vector<8x32xf32>
    tpu.vector_store %arg8[%c0_6, %c0_7], %7 {strides = array<i32>} : memref<8x32xf32, #tpu.memory_space<vmem>>, vector<8x32xf32>,
    %c0_i32_8 = arith.constant 0 : i32
    %9 = arith.cmpi eq, %arg1, %c0_i32_8 : i32
    %10 = arith.extui %9 : i1 to i32
    %c0_i32_9 = arith.constant 0 : i32
    %11 = arith.cmpi ne, %10, %c0_i32_9 : i32
    scf.if %11 {
      %c0_10 = arith.constant 0 : index
      %c0_11 = arith.constant 0 : index
      %12 = vector.load %arg8[%c0_10, %c0_11] : memref<8x32xf32, #tpu.memory_space<vmem>>, vector<8x32xf32>
      %c0_12 = arith.constant 0 : index
      %c0_13 = arith.constant 0 : index
      %13 = vector.load %arg4[%c0_12, %c0_13] : memref<1x32xf32, #tpu.memory_space<vmem>>, vector<1x32xf32>
      %14 = vector.broadcast %13 : vector<1x32xf32> to vector<8x32xf32>
      %15 = arith.addf %12, %14 : vector<8x32xf32>
      %16 = math.tanh %15 : vector<8x32xf32>
      %c0_14 = arith.constant 0 : index
      %c0_15 = arith.constant 0 : index
      %17 = vector.load %arg5[%c0_14, %c0_15] : memref<32x128xf32, #tpu.memory_space<vmem>>, vector<32x128xf32>
      %cst_16 = arith.constant dense<0.000000e+00> : vector<8x128xf32>
      %18 = tpu.matmul %16, %17, %cst_16 {dimension_numbers = #tpu.dot_dimension_numbers<[1], [0], [0], [1], [0, 0, 1, 1], [], []>} : vector<8x32xf32>, vector<32x128xf32>, vector<8x128xf32> -> vector<8x128xf32>
      %c0_17 = arith.constant 0 : index
      %c0_18 = arith.constant 0 : index
      %19 = vector.load %arg6[%c0_17, %c0_18] : memref<1x128xf32, #tpu.memory_space<vmem>>, vector<1x128xf32>
      %20 = vector.broadcast %19 : vector<1x128xf32> to vector<8x128xf32>
      %21 = arith.addf %18, %20 : vector<8x128xf32>
      %c0_19 = arith.constant 0 : index
      %c0_20 = arith.constant 0 : index
      %22 = vector.load %arg7[%c0_19, %c0_20] : memref<8x128xf32, #tpu.memory_space<vmem>>, vector<8x128xf32>
      tpu.vector_store %arg7[%c0_19, %c0_20], %21 {strides = array<i32>} : memref<8x128xf32, #tpu.memory_space<vmem>>, vector<8x128xf32>,
    } else {
    }
    return
  }
  func.func @transform_0(%arg0: i32, %arg1: i32) -> (i32, i32) {
    %c0_i32 = arith.constant 0 : i32
    return %arg0, %arg1 : i32, i32
  }
  func.func @transform_1(%arg0: i32, %arg1: i32) -> (i32, i32) {
    %c0_i32 = arith.constant 0 : i32
    %c0_i32_0 = arith.constant 0 : i32
    return %arg1, %c0_i32 : i32, i32
  }
  func.func @transform_2(%arg0: i32, %arg1: i32) -> (i32, i32) {
    %c0_i32 = arith.constant 0 : i32
    %c0_i32_0 = arith.constant 0 : i32
    %c0_i32_1 = arith.constant 0 : i32
    return %c0_i32, %c0_i32_0 : i32, i32
  }
  func.func @transform_3(%arg0: i32, %arg1: i32) -> (i32, i32) {
    %c0_i32 = arith.constant 0 : i32
    %c0_i32_0 = arith.constant 0 : i32
    %c0_i32_1 = arith.constant 0 : i32
    return %c0_i32, %c0_i32_0 : i32, i32
  }
  func.func @transform_4(%arg0: i32, %arg1: i32) -> (i32, i32) {
    %c0_i32 = arith.constant 0 : i32
    %c0_i32_0 = arith.constant 0 : i32
    %c0_i32_1 = arith.constant 0 : i32
    return %c0_i32, %c0_i32_0 : i32, i32
  }
  func.func @transform_5(%arg0: i32, %arg1: i32) -> (i32, i32) {
    %c0_i32 = arith.constant 0 : i32
    %c0_i32_0 = arith.constant 0 : i32
    return %arg0, %c0_i32 : i32, i32
  }
}

</mosaic_0001>

<bundles_post_ra>
// kernel: tpu_custom_call.1
= control target key start
LH: loop header
LB: loop body
LE: loop exit
PB: predicated region body
PF: predicated region fallthrough
CT: control target
= control target key end

     0   :  { %10 = vsyncpa [#allocation4], 0  ;;  %s454_s0 = inlined_call_operand.hbm [shape: f32[8,32], index: 0, kind: input, shape index: {}]   ;;  %s455_s1 = inlined_call_operand.hbm [shape: f32[32,32], index: 1, kind: input, shape index: {}]   ;;  %s456_s2 = inlined_call_operand.vmem [shape: f32[1,32], index: 2, kind: input, shape index: {}]   ;;  %s457_s3 = inlined_call_operand.hbm [shape: f32[32,128], index: 3, kind: input, shape index: {}]   ;;  %s458_s4 = inlined_call_operand.vmem [shape: f32[1,128], index: 4, kind: input, shape index: {}]   ;;  %s459_s5 = inlined_call_operand.hbm [shape: f32[8,128], index: 5, kind: output, shape index: {}]  }
   0x1   :  { %11 = vsyncpa [#allocation7], 0 }
   0x2   :  { %12 = vsyncpa [#allocation5], 0  ;;  %s394_s18 = smov [#allocation6]  }
   0x3   :  { %s28_s19 = sshll.u32 %s394_s18, 4  ;;  %s29_s19 = int_to_ptr.vmem [resolvable:$true] %s28_s19 }
   0x4   :  { %s316_s20 = scalar_lea.vmem %s29_s19, 512  ;;  %p321_p1 = scmp.lt.s32.totalorder %s29_s19, %s29_s19 }
   0x5   :  { %p317_p0 = scmp.ne.s32.totalorder %s29_s19, %s316_s20  ;;  %p322_p2 = scmp.lt.s32.totalorder %s316_s20, %s316_s20 }
   0x7   :  { %p323_p3 = por %p322_p2, %p321_p1 }
   0x9   :  { %p324_p4 = pnand %p323_p3, %p317_p0 }
   0xb   :  { %327 = shalt.err (!%p324_p4)
}
   0xc   :  { %s395_s21 = smov 128   ;;  %s396_s22 = smov 8  }
   0xd   :  { %34 = dma.hbm_to_vmem [thread:$0]  %s455_s1, 512, %s29_s19, [#allocation7], %s395_s21, %s395_s21, %s396_s22  }
   0xe   :  { %s397_s25 = smov [#allocation3]   ;;  %s398_s27 = smov [#allocation8]  }
   0xf   :  { %s19_s26 = sshll.u32 %s397_s25, 4  ;;  %s42_s28 = sshll.u32 %s398_s27, 4  ;;  %s20_s26 = int_to_ptr.vmem [resolvable:$true] %s19_s26  ;;  %s43_s28 = int_to_ptr.vmem [resolvable:$true] %s42_s28 }
  0x10   :  { %s336_s29 = scalar_lea.vmem %s20_s26, 128  ;;  %p341_p6 = scmp.lt.s32.totalorder %s20_s26, %s20_s26 }
  0x11   :  { %p337_p5 = scmp.ne.s32.totalorder %s20_s26, %s336_s29  ;;  %p342_p7 = scmp.lt.s32.totalorder %s336_s29, %s336_s29 }
  0x13   :  { %p343_p8 = por %p342_p7, %p341_p6 }
  0x15   :  { %p344_p9 = pnand %p343_p8, %p337_p5 }
  0x17   :  { %347 = shalt.err (!%p344_p9)
}
  0x18   :  { %22 = dma.hbm_to_vmem [thread:$0]  %s454_s0, 128, %s20_s26, [#allocation4]  }
  0x19   :  { %s356_s7 = scalar_lea.vmem %s43_s28, 512  ;;  %p361_p11 = scmp.lt.s32.totalorder %s43_s28, %s43_s28 }
  0x1a   :  { %p357_p10 = scmp.ne.s32.totalorder %s43_s28, %s356_s7  ;;  %p362_p12 = scmp.lt.s32.totalorder %s356_s7, %s356_s7 }
  0x1c   :  { %p363_p13 = por %p362_p12, %p361_p11 }
  0x1e   :  { %p364_p0 = pnand %p363_p13, %p357_p10 }
  0x20   :  { %367 = shalt.err (!%p364_p0)
}
  0x21   :  { %48 = dma.hbm_to_vmem [thread:$0]  %s457_s3, 512, %s43_s28, [#allocation7], %s395_s21, %s395_s21, %s396_s22  }
  0x22   :  { %388 = dma.done.wait [#allocation4], 128  }
  0x23   :  { %389 = vsyncadd [#allocation4], 4294967168 }
  0x24   :  { %390 = dma.done.wait [#allocation7], 1024  }
  0x25   :  { %391 = vsyncadd [#allocation7], 4294966272  ;;  %vm64_vm0 = vcmask 261120   ;;  %v399_v0 = vmov 0.0   ;;  %vm400_vm1 = vmmov 0   ;;  %v71_v1 = vld [vmem:[#allocation6 + $0x18] sm:$0xff] }
  0x26   :  { %276 = vmatprep.subr.mxu0 %v399_v0  ;;  %284 = vmatprep.mubr.msk.f32.mxu0 %vm400_vm1, %v399_v0  ;;  %65 = vst.msk [vmem:[#allocation2] sm:$0xff] %vm64_vm0, %v399_v0  ;;  %v70_v2 = vld [vmem:[#allocation6 + $0x10] sm:$0xff]  ;;  %v69_v3 = vld [vmem:[#allocation6 + $0x8] sm:$0xff]  ;;  %v68_v4 = vld [vmem:[#allocation6] sm:$0xff]  ;;  %s401_s11 = smov [#allocation9]  }
  0x27   :  { %287 = vmatprep.subr.mxu1 %v399_v0  ;;  %295 = vmatprep.mubr.msk.f32.mxu1 %vm400_vm1, %v399_v0  ;;  %v66_v5 = vld [vmem:[#allocation3] sm:$0xff]  ;;  %v163_v7 = vld [vmem:[#allocation8 + $0x10] sm:$0xff]  ;;  %v162_v8 = vld [vmem:[#allocation8 + $0x8] sm:$0xff]  ;;  %s252_s12 = sshll.u32 %s401_s11, 4  ;;  %s253_s12 = int_to_ptr.vmem [resolvable:$true] %s252_s12 }
  0x28   :  { %277 = vmatpush3.msra.mxu0 %v71_v1  ;;  %v164_v6 = vld [vmem:[#allocation8 + $0x18] sm:$0xff]  ;;  %v161_v9 = vld [vmem:[#allocation8] sm:$0xff]  ;;  %v263_v14 = vld [vmem:[%s456_s2] ss:$0 sm:$0xff]  ;;  %s368_s13 = scalar_lea.vmem %s253_s12, 128  ;;  %p373_p2 = scmp.lt.s32.totalorder %s253_s12, %s253_s12 }
  0x29   :  { %278 = vmatprep.subr.mxu0 %v399_v0  ;;  %288 = vmatpush3.msra.mxu1 %v164_v6  ;;  %v264_v18 = vld [vmem:[%s458_s4] ss:$0 sm:$0xff]  ;;  %p369_p1 = scmp.ne.s32.totalorder %s253_s12, %s368_s13  ;;  %p374_p3 = scmp.lt.s32.totalorder %s368_s13, %s368_s13 }
  0x2a   :  { %279 = vmatpush3.msra.mxu0 %v70_v2  ;;  %289 = vmatprep.subr.mxu1 %v399_v0 }
  0x2b   :  { %280 = vmatprep.subr.mxu0 %v399_v0  ;;  %290 = vmatpush3.msra.mxu1 %v163_v7  ;;  %p375_p4 = por %p374_p3, %p373_p2 }
  0x2c   :  { %281 = vmatpush3.msra.mxu0 %v69_v3  ;;  %291 = vmatprep.subr.mxu1 %v399_v0 }
  0x2d   :  { %282 = vmatprep.subr.mxu0 %v399_v0  ;;  %292 = vmatpush3.msra.mxu1 %v162_v8  ;;  %v67_v10 = vld [vmem:[#allocation2] sm:$0xff]  ;;  %p376_p5 = pnand %p375_p4, %p369_p1 }
  0x2e   :  { %283 = vmatpush3.msra.mxu0 %v68_v4  ;;  %293 = vmatprep.subr.mxu1 %v399_v0 }
  0x2f   :  { %285 = vmatmul.mubr.msk.f32.vlgmr.msra.gmra.mxu0 %vm64_vm0, %v66_v5  ;;  %294 = vmatpush3.msra.mxu1 %v161_v9 }
  0xef   :  { %v142_v11 = vpop.f32.mrf.mxu0 }
  0xf0   :  { %v146_v12 = vadd.f32 %v142_v11, %v67_v10 }
  0xf1   :  { %v286_v13 = vpop.f32.mrf.mxu0 }
  0xf2   :  { %147 = vst.msk [vmem:[#allocation2] sm:$0xff] %vm64_vm0, %v146_v12 }
  0xf9   :  { %v151_v15 = vld [vmem:[#allocation2] sm:$0xff] }
  0xfa   :  { %v159_v16 = vadd.f32 %v263_v14, %v151_v15 }
  0xfc   :  { %306 = vtanh.f32 %v159_v16 }
 0x109   :  { %v307_v17 = vpop.eup %306 }
 0x10a   :  { %296 = vmatmul.mubr.msk.f32.vlgmr.msra.gmra.mxu1 %vm64_vm0, %v307_v17 }
 0x1ca   :  { %v241_v19 = vpop.f32.mrf.mxu1 }
 0x1cb   :  { %v242_v20 = vadd.f32 %v264_v18, %v241_v19 }
 0x1cc   :  { %v297_v21 = vpop.f32.mrf.mxu1 }
 0x1cd   :  { %245 = vst [vmem:[#allocation9] sm:$0xff] %v242_v20 }
 0x1ce   :  { %379 = shalt.err (!%p376_p5)
}
 0x1cf   :  { %255 = dma.vmem_to_hbm [thread:$0]  %s253_s12, 128, %s459_s5, [#allocation5]  }
 0x1d0   :  { %392 = dma.done.wait [#allocation5], 128  }
 0x1d1   :  { %393 = vsyncadd [#allocation5], 4294967168 }
 0x1d2   :  { %259 = vsyncpa [#allocation4], 1 }
 0x1d3   :  { %260 = vsyncpa [#allocation7], 1 }
 0x1d4   :  { %261 = vsyncpa [#allocation5], 1 }

// kernel: tpu_custom_call.1
= control target key start
LH: loop header
LB: loop body
LE: loop exit
PB: predicated region body
PF: predicated region fallthrough
CT: control target
= control target key end

     0   :  { %10 = vsyncpa [#allocation4], 0  ;;  %s454_s0 = inlined_call_operand.hbm [shape: f32[8,32], index: 0, kind: input, shape index: {}]   ;;  %s455_s1 = inlined_call_operand.hbm [shape: f32[32,32], index: 1, kind: input, shape index: {}]   ;;  %s456_s2 = inlined_call_operand.vmem [shape: f32[1,32], index: 2, kind: input, shape index: {}]   ;;  %s457_s3 = inlined_call_operand.hbm [shape: f32[32,128], index: 3, kind: input, shape index: {}]   ;;  %s458_s4 = inlined_call_operand.vmem [shape: f32[1,128], index: 4, kind: input, shape index: {}]   ;;  %s459_s5 = inlined_call_operand.hbm [shape: f32[8,128], index: 5, kind: output, shape index: {}]  }
   0x1   :  { %11 = vsyncpa [#allocation7], 0 }
   0x2   :  { %12 = vsyncpa [#allocation5], 0  ;;  %s394_s18 = smov [#allocation6]  }
   0x3   :  { %s28_s19 = sshll.u32 %s394_s18, 4  ;;  %s29_s19 = int_to_ptr.vmem [resolvable:$true] %s28_s19 }
   0x4   :  { %s316_s20 = scalar_lea.vmem %s29_s19, 512  ;;  %p321_p1 = scmp.lt.s32.totalorder %s29_s19, %s29_s19 }
   0x5   :  { %p317_p0 = scmp.ne.s32.totalorder %s29_s19, %s316_s20  ;;  %p322_p2 = scmp.lt.s32.totalorder %s316_s20, %s316_s20 }
   0x7   :  { %p323_p3 = por %p322_p2, %p321_p1 }
   0x9   :  { %p324_p4 = pnand %p323_p3, %p317_p0 }
   0xb   :  { %327 = shalt.err (!%p324_p4)
}
   0xc   :  { %s395_s21 = smov 128   ;;  %s396_s22 = smov 8  }
   0xd   :  { %34 = dma.hbm_to_vmem [thread:$0]  %s455_s1, 512, %s29_s19, [#allocation7], %s395_s21, %s395_s21, %s396_s22  }
   0xe   :  { %s397_s25 = smov [#allocation3]   ;;  %s398_s27 = smov [#allocation8]  }
   0xf   :  { %s19_s26 = sshll.u32 %s397_s25, 4  ;;  %s42_s28 = sshll.u32 %s398_s27, 4  ;;  %s20_s26 = int_to_ptr.vmem [resolvable:$true] %s19_s26  ;;  %s43_s28 = int_to_ptr.vmem [resolvable:$true] %s42_s28 }
  0x10   :  { %s336_s29 = scalar_lea.vmem %s20_s26, 128  ;;  %p341_p6 = scmp.lt.s32.totalorder %s20_s26, %s20_s26 }
  0x11   :  { %p337_p5 = scmp.ne.s32.totalorder %s20_s26, %s336_s29  ;;  %p342_p7 = scmp.lt.s32.totalorder %s336_s29, %s336_s29 }
  0x13   :  { %p343_p8 = por %p342_p7, %p341_p6 }
  0x15   :  { %p344_p9 = pnand %p343_p8, %p337_p5 }
  0x17   :  { %347 = shalt.err (!%p344_p9)
}
  0x18   :  { %22 = dma.hbm_to_vmem [thread:$0]  %s454_s0, 128, %s20_s26, [#allocation4]  }
  0x19   :  { %s356_s7 = scalar_lea.vmem %s43_s28, 512  ;;  %p361_p11 = scmp.lt.s32.totalorder %s43_s28, %s43_s28 }
  0x1a   :  { %p357_p10 = scmp.ne.s32.totalorder %s43_s28, %s356_s7  ;;  %p362_p12 = scmp.lt.s32.totalorder %s356_s7, %s356_s7 }
  0x1c   :  { %p363_p13 = por %p362_p12, %p361_p11 }
  0x1e   :  { %p364_p0 = pnand %p363_p13, %p357_p10 }
  0x20   :  { %367 = shalt.err (!%p364_p0)
}
  0x21   :  { %48 = dma.hbm_to_vmem [thread:$0]  %s457_s3, 512, %s43_s28, [#allocation7], %s395_s21, %s395_s21, %s396_s22  }
  0x22   :  { %388 = dma.done.wait [#allocation4], 128  }
  0x23   :  { %389 = vsyncadd [#allocation4], 4294967168 }
  0x24   :  { %390 = dma.done.wait [#allocation7], 1024  }
  0x25   :  { %391 = vsyncadd [#allocation7], 4294966272  ;;  %vm64_vm0 = vcmask 261120   ;;  %v399_v0 = vmov 0.0   ;;  %vm400_vm1 = vmmov 0   ;;  %v71_v1 = vld [vmem:[#allocation6 + $0x18] sm:$0xff] }
  0x26   :  { %276 = vmatprep.subr.mxu0 %v399_v0  ;;  %284 = vmatprep.mubr.msk.f32.mxu0 %vm400_vm1, %v399_v0  ;;  %65 = vst.msk [vmem:[#allocation2] sm:$0xff] %vm64_vm0, %v399_v0  ;;  %v70_v2 = vld [vmem:[#allocation6 + $0x10] sm:$0xff]  ;;  %v69_v3 = vld [vmem:[#allocation6 + $0x8] sm:$0xff]  ;;  %v68_v4 = vld [vmem:[#allocation6] sm:$0xff]  ;;  %s401_s11 = smov [#allocation9]  }
  0x27   :  { %287 = vmatprep.subr.mxu1 %v399_v0  ;;  %295 = vmatprep.mubr.msk.f32.mxu1 %vm400_vm1, %v399_v0  ;;  %v66_v5 = vld [vmem:[#allocation3] sm:$0xff]  ;;  %v163_v7 = vld [vmem:[#allocation8 + $0x10] sm:$0xff]  ;;  %v162_v8 = vld [vmem:[#allocation8 + $0x8] sm:$0xff]  ;;  %s252_s12 = sshll.u32 %s401_s11, 4  ;;  %s253_s12 = int_to_ptr.vmem [resolvable:$true] %s252_s12 }
  0x28   :  { %277 = vmatpush3.msra.mxu0 %v71_v1  ;;  %v164_v6 = vld [vmem:[#allocation8 + $0x18] sm:$0xff]  ;;  %v161_v9 = vld [vmem:[#allocation8] sm:$0xff]  ;;  %v263_v14 = vld [vmem:[%s456_s2] ss:$0 sm:$0xff]  ;;  %s368_s13 = scalar_lea.vmem %s253_s12, 128  ;;  %p373_p2 = scmp.lt.s32.totalorder %s253_s12, %s253_s12 }
  0x29   :  { %278 = vmatprep.subr.mxu0 %v399_v0  ;;  %288 = vmatpush3.msra.mxu1 %v164_v6  ;;  %v264_v18 = vld [vmem:[%s458_s4] ss:$0 sm:$0xff]  ;;  %p369_p1 = scmp.ne.s32.totalorder %s253_s12, %s368_s13  ;;  %p374_p3 = scmp.lt.s32.totalorder %s368_s13, %s368_s13 }
  0x2a   :  { %279 = vmatpush3.msra.mxu0 %v70_v2  ;;  %289 = vmatprep.subr.mxu1 %v399_v0 }
  0x2b   :  { %280 = vmatprep.subr.mxu0 %v399_v0  ;;  %290 = vmatpush3.msra.mxu1 %v163_v7  ;;  %p375_p4 = por %p374_p3, %p373_p2 }
  0x2c   :  { %281 = vmatpush3.msra.mxu0 %v69_v3  ;;  %291 = vmatprep.subr.mxu1 %v399_v0 }
  0x2d   :  { %282 = vmatprep.subr.mxu0 %v399_v0  ;;  %292 = vmatpush3.msra.mxu1 %v162_v8  ;;  %v67_v10 = vld [vmem:[#allocation2] sm:$0xff]  ;;  %p376_p5 = pnand %p375_p4, %p369_p1 }
  0x2e   :  { %283 = vmatpush3.msra.mxu0 %v68_v4  ;;  %293 = vmatprep.subr.mxu1 %v399_v0 }
  0x2f   :  { %285 = vmatmul.mubr.msk.f32.vlgmr.msra.gmra.mxu0 %vm64_vm0, %v66_v5  ;;  %294 = vmatpush3.msra.mxu1 %v161_v9 }
  0xef   :  { %v142_v11 = vpop.f32.mrf.mxu0 }
  0xf0   :  { %v146_v12 = vadd.f32 %v142_v11, %v67_v10 }
  0xf1   :  { %v286_v13 = vpop.f32.mrf.mxu0 }
  0xf2   :  { %147 = vst.msk [vmem:[#allocation2] sm:$0xff] %vm64_vm0, %v146_v12 }
  0xf9   :  { %v151_v15 = vld [vmem:[#allocation2] sm:$0xff] }
  0xfa   :  { %v159_v16 = vadd.f32 %v263_v14, %v151_v15 }
  0xfc   :  { %306 = vtanh.f32 %v159_v16 }
 0x109   :  { %v307_v17 = vpop.eup %306 }
 0x10a   :  { %296 = vmatmul.mubr.msk.f32.vlgmr.msra.gmra.mxu1 %vm64_vm0, %v307_v17 }
 0x1ca   :  { %v241_v19 = vpop.f32.mrf.mxu1 }
 0x1cb   :  { %v242_v20 = vadd.f32 %v264_v18, %v241_v19 }
 0x1cc   :  { %v297_v21 = vpop.f32.mrf.mxu1 }
 0x1cd   :  { %245 = vst [vmem:[#allocation9] sm:$0xff] %v242_v20 }
 0x1ce   :  { %379 = shalt.err (!%p376_p5)
}
 0x1cf   :  { %255 = dma.vmem_to_hbm [thread:$0]  %s253_s12, 128, %s459_s5, [#allocation5]  }
 0x1d0   :  { %392 = dma.done.wait [#allocation5], 128  }
 0x1d1   :  { %393 = vsyncadd [#allocation5], 4294967168 }
 0x1d2   :  { %259 = vsyncpa [#allocation4], 1 }
 0x1d3   :  { %260 = vsyncpa [#allocation7], 1 }
 0x1d4   :  { %261 = vsyncpa [#allocation5], 1 }

</bundles_post_ra>
